<compile_context>
chip_gen: v7x
topology: tpu7x:2x2x1
jax: 0.10.0
libtpu: 0.0.40
codegen_flags: <defaults>
</compile_context>

<pallas_src>
import functools

import jax
import jax.numpy as jnp
from jax import lax
from jax.experimental import pallas as pl
from jax.experimental.pallas import tpu as pltpu

WIDTH = 64


def _enc_kernel(xy_ref, w1_ref, b1_ref, w2_ref, b2_ref, w5_ref, b5_ref,
                pred_ref, sse_ref, *, tile_m, n_total, needs_mask):
    """One lane-dense batch tile of the Enc forward pass + partial SSE."""
    xin = xy_ref[0:1, :]                                  # (1, TM)  x[:, 0]
    y = xy_ref[1:2, :]                                    # (1, TM)  x[:, 1]

    # fc1: Linear(1, 64) as an outer-product broadcast on the VPU (f32).
    h1 = jnp.maximum(w1_ref[...] * xin + b1_ref[...], 0.0)          # (64, TM)

    # fc2: Linear(64, 64) on the MXU; batch is the streamed N dimension.
    # Operands in w2's dtype (bf16 by default -> half the MXU feed vregs),
    # accumulation stays f32.
    h2 = jnp.dot(w2_ref[...], h1.astype(w2_ref.dtype),
                 preferred_element_type=jnp.float32)
    h2 = jnp.maximum(h2 + b2_ref[...], 0.0)                          # (64, TM)

    # fc5: Linear(64, 1) as VPU multiply + cross-sublane reduce (keeps the
    # MXU path short and the result lane-dense).
    pred = jnp.sum(h2 * w5_ref[...], axis=0, keepdims=True) + b5_ref[...]  # (1, TM)
    pred_ref[...] = pred                                  # lane-dense store

    # Per-tile sum of squared errors (masked for padded lanes).
    diff = pred - y
    if needs_mask:
        lane = lax.broadcasted_iota(jnp.int32, (1, tile_m), 1)
        gidx = pl.program_id(0) * tile_m + lane
        diff = jnp.where(gidx < n_total, diff, 0.0)
    sse = jnp.sum(diff * diff)
    sse_ref[...] = jnp.full((1, 128), sse, dtype=jnp.float32)


def enc_forward(x, params, *, tile_m=8192, use_bf16=True):
    """x: [N, 2] float32.  Returns (pred [N, 1] float32, loss scalar float32)."""
    n = x.shape[0]
    w1, b1, w2, b2, w5, b5 = params
    w2_k = w2.astype(jnp.bfloat16) if use_bf16 else w2   # grid-resident: cast once

    # --- Tile sizing -------------------------------------------------------
    # Lanes come in multiples of 128.  Big default tile (8192) amortizes the
    # per-step pipeline overhead; tiny batches are split into >=2 tiles when
    # possible so the "parallel" grid axis can shard across v7x's 2 cores.
    tile_m = max(128, (int(tile_m) // 128) * 128)
    n_pad128 = ((n + 127) // 128) * 128
    if n_pad128 <= tile_m:
        tile_m = max(128, ((n_pad128 // 2) // 128) * 128)
    num_tiles = -(-n // tile_m)            # cdiv
    n_pad = num_tiles * tile_m
    needs_mask = n_pad != n

    # --- Input layout: single (2, N_pad) lane-major slab (one copy) --------
    # TODO(synk): if the caller can provide x already as (2, N) lane-major,
    # pass it straight through and skip this transpose entirely.
    xy = x.T                                              # (2, N)
    if needs_mask:
        xy = jnp.pad(xy, ((0, 0), (0, n_pad - n)))
    xy = xy.astype(jnp.float32)

    kernel = functools.partial(
        _enc_kernel, tile_m=tile_m, n_total=n, needs_mask=needs_mask)

    rep = lambda shape: pl.BlockSpec(shape, lambda i: (0, 0))  # resident weights

    flops = 2 * n_pad * WIDTH * (WIDTH + 2)                 # fc1 + fc2 + fc5
    bytes_accessed = (4 * (3 * n_pad + 4 * WIDTH + 1 + 128 * num_tiles)
                      + WIDTH * WIDTH * w2_k.dtype.itemsize)

    pred_row, sse_parts = pl.pallas_call(
        kernel,
        out_shape=(
            jax.ShapeDtypeStruct((1, n_pad), jnp.float32),           # pred (lane-dense)
            jax.ShapeDtypeStruct((1, num_tiles * 128), jnp.float32), # SSE partials
        ),
        grid_spec=pltpu.PrefetchScalarGridSpec(
            num_scalar_prefetch=0,
            grid=(num_tiles,),
            in_specs=[
                pl.BlockSpec((2, tile_m), lambda i: (0, i)),   # packed [xin; y]
                rep((WIDTH, 1)),                               # w1  (fc1.weight)
                rep((WIDTH, 1)),                               # b1
                rep((WIDTH, WIDTH)),                           # w2  (fc2.weight)
                rep((WIDTH, 1)),                               # b2
                rep((WIDTH, 1)),                               # w5  (fc5.weight.T)
                rep((1, 1)),                                   # b5
            ],
            out_specs=[
                pl.BlockSpec((1, tile_m), lambda i: (0, i)),   # pred block
                pl.BlockSpec((1, 128), lambda i: (0, i)),      # per-tile SSE
            ],
        ),
        compiler_params=pltpu.CompilerParams(
            dimension_semantics=("parallel",),       # no cross-step state -> megacore OK
            vmem_limit_bytes=48 * 1024 * 1024,       # < 64 MiB physical on v7x
        ),
        cost_estimate=pl.CostEstimate(
            flops=flops, transcendentals=0, bytes_accessed=bytes_accessed),
    )(xy, w1, b1, w2_k, b2, w5, b5)

    pred = pred_row[0, :n].reshape(n, 1)
    sse_total = jnp.sum(sse_parts.reshape(num_tiles, 128)[:, 0])
    loss = sse_total / jnp.float32(n)
    return pred, loss


def init_params(key):
    """Deterministic synthetic parameters (kernel-native layouts).

    w1 == fc1.weight (64,1); b1 == fc1.bias[:,None]; w2 == fc2.weight (64,64);
    b2 == fc2.bias[:,None]; w5 == fc5.weight.T (64,1); b5 == fc5.bias[None,:].
    """
    k1, k2, k3, k4, k5, k6 = jax.random.split(key, 6)
    w1 = jax.random.normal(k1, (WIDTH, 1), jnp.float32) * 0.5
    b1 = jax.random.normal(k2, (WIDTH, 1), jnp.float32) * 0.1
    w2 = jax.random.normal(k3, (WIDTH, WIDTH), jnp.float32) * 0.1
    b2 = jax.random.normal(k4, (WIDTH, 1), jnp.float32) * 0.1
    w5 = jax.random.normal(k5, (WIDTH, 1), jnp.float32) * 0.1
    b5 = jax.random.normal(k6, (1, 1), jnp.float32) * 0.1
    return w1, b1, w2, b2, w5, b5


def enc_reference(x, params):
    """Pure-JAX reference of the PyTorch forward pass (batch on rows, f32)."""
    w1, b1, w2, b2, w5, b5 = params
    xin = x[:, 0:1]
    y = x[:, 1:2]
    h1 = jax.nn.relu(xin @ w1.T + b1.T)
    h2 = jax.nn.relu(h1 @ w2.T + b2.T)
    pred = h2 @ w5 + b5
    loss = jnp.mean((pred - y) ** 2)
    return pred, loss


if __name__ == "__main__":
    key = jax.random.PRNGKey(0)
    pkey, xkey1, xkey2, xkey3 = jax.random.split(key, 4)
    params = init_params(pkey)

    # 1) Padded / masked path, f32 matmul (tight tolerance, small-batch split).
    x1 = jax.random.normal(xkey1, (300, 2), jnp.float32)
    pred1, loss1 = enc_forward(x1, params, use_bf16=False)
    pred1 = jax.block_until_ready(pred1)
    loss1 = jax.block_until_ready(loss1)
    rp1, rl1 = enc_reference(x1, params)
    assert jnp.allclose(pred1, rp1, atol=1e-4, rtol=1e-4)
    assert jnp.allclose(loss1, rl1, atol=1e-4, rtol=1e-4)

    # 2) Same inputs through the default bf16-MXU path (looser tolerance).
    pred1b, loss1b = enc_forward(x1, params)
    pred1b = jax.block_until_ready(pred1b)
    loss1b = jax.block_until_ready(loss1b)
    assert jnp.allclose(pred1b, rp1, atol=3e-2, rtol=3e-2)
    assert jnp.allclose(loss1b, rl1, atol=3e-2, rtol=3e-2)

    # 3) Multi-tile, no-padding path (exercises the parallel grid), bf16.
    x2 = jax.random.normal(xkey2, (512, 2), jnp.float32)
    pred2, loss2 = enc_forward(x2, params)
    pred2 = jax.block_until_ready(pred2)
    loss2 = jax.block_until_ready(loss2)
    rp2, rl2 = enc_reference(x2, params)
    assert jnp.allclose(pred2, rp2, atol=3e-2, rtol=3e-2)
    assert jnp.allclose(loss2, rl2, atol=3e-2, rtol=3e-2)

    # 4) Explicit small tile + masking + several grid steps, f32 path.
    x3 = jax.random.normal(xkey3, (1000, 2), jnp.float32)
    pred3, loss3 = enc_forward(x3, params, tile_m=256, use_bf16=False)
    pred3 = jax.block_until_ready(pred3)
    loss3 = jax.block_until_ready(loss3)
    rp3, rl3 = enc_reference(x3, params)
    assert jnp.allclose(pred3, rp3, atol=1e-4, rtol=1e-4)
    assert jnp.allclose(loss3, rl3, atol=1e-4, rtol=1e-4)

    print("KERNEL_OK")
</pallas_src>

<mosaic_0001>
module attributes {stable_mosaic.version = 11 : i64} {
  func.func @_enc_kernel(%arg0: i32, %arg1: memref<2x128xf32, #tpu.memory_space<vmem>>, %arg2: memref<64x1xf32, #tpu.memory_space<vmem>>, %arg3: memref<64x1xf32, #tpu.memory_space<vmem>>, %arg4: memref<64x64xf32, #tpu.memory_space<vmem>>, %arg5: memref<64x1xf32, #tpu.memory_space<vmem>>, %arg6: memref<64x1xf32, #tpu.memory_space<vmem>>, %arg7: memref<1x1xf32, #tpu.memory_space<vmem>>, %arg8: memref<1x128xf32, #tpu.memory_space<vmem>>, %arg9: memref<1x128xf32, #tpu.memory_space<vmem>>) attributes {dimension_semantics = [#tpu.dimension_semantics<parallel>], iteration_bounds = array<i64: 3>, scalar_prefetch = 0 : i64, scratch_operands = 0 : i64, tpu.core_type = #tpu.core_type<tc>, window_params = [{transform_indices = @transform_0, window_bounds = array<i64: 2, 128>}, {pipeline_mode = #tpu.pipeline_mode<synchronous>, transform_indices = @transform_1, window_bounds = array<i64: 64, 1>}, {pipeline_mode = #tpu.pipeline_mode<synchronous>, transform_indices = @transform_2, window_bounds = array<i64: 64, 1>}, {pipeline_mode = #tpu.pipeline_mode<synchronous>, transform_indices = @transform_3, window_bounds = array<i64: 64, 64>}, {pipeline_mode = #tpu.pipeline_mode<synchronous>, transform_indices = @transform_4, window_bounds = array<i64: 64, 1>}, {pipeline_mode = #tpu.pipeline_mode<synchronous>, transform_indices = @transform_5, window_bounds = array<i64: 64, 1>}, {pipeline_mode = #tpu.pipeline_mode<synchronous>, transform_indices = @transform_6, window_bounds = array<i64: 1, 1>}, {transform_indices = @transform_7, window_bounds = array<i64: 1, 128>}, {transform_indices = @transform_8, window_bounds = array<i64: 1, 128>}]} {
    %c0 = arith.constant 0 : index
    %c0_0 = arith.constant 0 : index
    %0 = vector.load %arg1[%c0, %c0_0] : memref<2x128xf32, #tpu.memory_space<vmem>>, vector<1x128xf32>
    %c1 = arith.constant 1 : index
    %c0_1 = arith.constant 0 : index
    %1 = vector.load %arg1[%c1, %c0_1] : memref<2x128xf32, #tpu.memory_space<vmem>>, vector<1x128xf32>
    %c0_2 = arith.constant 0 : index
    %c0_3 = arith.constant 0 : index
    %2 = vector.load %arg2[%c0_2, %c0_3] : memref<64x1xf32, #tpu.memory_space<vmem>>, vector<64x1xf32>
    %3 = vector.broadcast %2 : vector<64x1xf32> to vector<64x128xf32>
    %4 = vector.broadcast %0 : vector<1x128xf32> to vector<64x128xf32>
    %5 = arith.mulf %3, %4 : vector<64x128xf32>
    %c0_4 = arith.constant 0 : index
    %c0_5 = arith.constant 0 : index
    %6 = vector.load %arg3[%c0_4, %c0_5] : memref<64x1xf32, #tpu.memory_space<vmem>>, vector<64x1xf32>
    %7 = vector.broadcast %6 : vector<64x1xf32> to vector<64x128xf32>
    %8 = arith.addf %5, %7 : vector<64x128xf32>
    %cst = arith.constant 0.000000e+00 : f32
    %9 = vector.broadcast %cst : f32 to vector<64x128xf32>
    %10 = arith.maximumf %8, %9 : vector<64x128xf32>
    %c0_6 = arith.constant 0 : index
    %c0_7 = arith.constant 0 : index
    %11 = vector.load %arg4[%c0_6, %c0_7] : memref<64x64xf32, #tpu.memory_space<vmem>>, vector<64x64xf32>
    %cst_8 = arith.constant dense<0.000000e+00> : vector<64x128xf32>
    %12 = tpu.matmul %11, %10, %cst_8 {dimension_numbers = #tpu.dot_dimension_numbers<[1], [0], [0], [1], [0, 0, 1, 1], [], []>} : vector<64x64xf32>, vector<64x128xf32>, vector<64x128xf32> -> vector<64x128xf32>
    %c0_9 = arith.constant 0 : index
    %c0_10 = arith.constant 0 : index
    %13 = vector.load %arg5[%c0_9, %c0_10] : memref<64x1xf32, #tpu.memory_space<vmem>>, vector<64x1xf32>
    %14 = vector.broadcast %13 : vector<64x1xf32> to vector<64x128xf32>
    %15 = arith.addf %12, %14 : vector<64x128xf32>
    %cst_11 = arith.constant 0.000000e+00 : f32
    %16 = vector.broadcast %cst_11 : f32 to vector<64x128xf32>
    %17 = arith.maximumf %15, %16 : vector<64x128xf32>
    %c0_12 = arith.constant 0 : index
    %c0_13 = arith.constant 0 : index
    %18 = vector.load %arg6[%c0_12, %c0_13] : memref<64x1xf32, #tpu.memory_space<vmem>>, vector<64x1xf32>
    %19 = vector.broadcast %18 : vector<64x1xf32> to vector<64x128xf32>
    %20 = arith.mulf %17, %19 : vector<64x128xf32>
    %cst_14 = arith.constant dense<0.000000e+00> : vector<128xf32>
    %21 = vector.multi_reduction <add>, %20, %cst_14 [0] : vector<64x128xf32> to vector<128xf32>
    %22 = vector.shape_cast %21 : vector<128xf32> to vector<1x128xf32>
    %c0_15 = arith.constant 0 : index
    %c0_16 = arith.constant 0 : index
    %23 = vector.load %arg7[%c0_15, %c0_16] : memref<1x1xf32, #tpu.memory_space<vmem>>, vector<1x1xf32>
    %24 = vector.broadcast %23 : vector<1x1xf32> to vector<1x128xf32>
    %25 = arith.addf %22, %24 : vector<1x128xf32>
    %c0_17 = arith.constant 0 : index
    %c0_18 = arith.constant 0 : index
    %26 = vector.load %arg8[%c0_17, %c0_18] : memref<1x128xf32, #tpu.memory_space<vmem>>, vector<1x128xf32>
    tpu.vector_store %arg8[%c0_17, %c0_18], %25 {strides = array<i32>} : memref<1x128xf32, #tpu.memory_space<vmem>>, vector<1x128xf32>,
    %27 = arith.subf %25, %1 : vector<1x128xf32>
    %28 = tpu.iota {dimensions = array<i32: 1>} : vector<1x128xi32>
    %c128_i32 = arith.constant 128 : i32
    %29 = arith.muli %arg0, %c128_i32 : i32
    %30 = vector.broadcast %29 : i32 to vector<1x128xi32>
    %31 = arith.addi %30, %28 : vector<1x128xi32>
    %c300_i32 = arith.constant 300 : i32
    %32 = vector.broadcast %c300_i32 : i32 to vector<1x128xi32>
    %33 = arith.cmpi slt, %31, %32 : vector<1x128xi32>
    %cst_19 = arith.constant 0.000000e+00 : f32
    %34 = vector.broadcast %cst_19 : f32 to vector<1x128xf32>
    %35 = arith.select %33, %27, %34 : vector<1x128xi1>, vector<1x128xf32>
    %36 = arith.mulf %35, %35 : vector<1x128xf32>
    %37 = vector.shape_cast %36 : vector<1x128xf32> to vector<1x1x128xf32>
    %cst_20 = arith.constant dense<0.000000e+00> : vector<1xf32>
    %38 = vector.multi_reduction <add>, %37, %cst_20 [1, 2] : vector<1x1x128xf32> to vector<1xf32>
    %39 = vector.shape_cast %38 : vector<1xf32> to vector<1x1x1xf32>
    %40 = vector.extract %39[0, 0, 0] : f32 from vector<1x1x1xf32>
    %41 = vector.broadcast %40 : f32 to vector<1x128xf32>
    %c0_21 = arith.constant 0 : index
    %c0_22 = arith.constant 0 : index
    %42 = vector.load %arg9[%c0_21, %c0_22] : memref<1x128xf32, #tpu.memory_space<vmem>>, vector<1x128xf32>
    tpu.vector_store %arg9[%c0_21, %c0_22], %41 {strides = array<i32>} : memref<1x128xf32, #tpu.memory_space<vmem>>, vector<1x128xf32>,
    return
  }
  func.func @transform_0(%arg0: i32) -> (i32, i32) {
    %c0_i32 = arith.constant 0 : i32
    %c0_i32_0 = arith.constant 0 : i32
    return %c0_i32, %arg0 : i32, i32
  }
  func.func @transform_1(%arg0: i32) -> (i32, i32) {
    %c0_i32 = arith.constant 0 : i32
    %c0_i32_0 = arith.constant 0 : i32
    %c0_i32_1 = arith.constant 0 : i32
    return %c0_i32, %c0_i32_0 : i32, i32
  }
  func.func @transform_2(%arg0: i32) -> (i32, i32) {
    %c0_i32 = arith.constant 0 : i32
    %c0_i32_0 = arith.constant 0 : i32
    %c0_i32_1 = arith.constant 0 : i32
    return %c0_i32, %c0_i32_0 : i32, i32
  }
  func.func @transform_3(%arg0: i32) -> (i32, i32) {
    %c0_i32 = arith.constant 0 : i32
    %c0_i32_0 = arith.constant 0 : i32
    %c0_i32_1 = arith.constant 0 : i32
    return %c0_i32, %c0_i32_0 : i32, i32
  }
  func.func @transform_4(%arg0: i32) -> (i32, i32) {
    %c0_i32 = arith.constant 0 : i32
    %c0_i32_0 = arith.constant 0 : i32
    %c0_i32_1 = arith.constant 0 : i32
    return %c0_i32, %c0_i32_0 : i32, i32
  }
  func.func @transform_5(%arg0: i32) -> (i32, i32) {
    %c0_i32 = arith.constant 0 : i32
    %c0_i32_0 = arith.constant 0 : i32
    %c0_i32_1 = arith.constant 0 : i32
    return %c0_i32, %c0_i32_0 : i32, i32
  }
  func.func @transform_6(%arg0: i32) -> (i32, i32) {
    %c0_i32 = arith.constant 0 : i32
    %c0_i32_0 = arith.constant 0 : i32
    %c0_i32_1 = arith.constant 0 : i32
    return %c0_i32, %c0_i32_0 : i32, i32
  }
  func.func @transform_7(%arg0: i32) -> (i32, i32) {
    %c0_i32 = arith.constant 0 : i32
    %c0_i32_0 = arith.constant 0 : i32
    return %c0_i32, %arg0 : i32, i32
  }
  func.func @transform_8(%arg0: i32) -> (i32, i32) {
    %c0_i32 = arith.constant 0 : i32
    %c0_i32_0 = arith.constant 0 : i32
    return %c0_i32, %arg0 : i32, i32
  }
}

</mosaic_0001>

<bundles_post_ra>
// kernel: tpu_custom_call.1
= control target key start
LH: loop header
LB: loop body
LE: loop exit
PB: predicated region body
PF: predicated region fallthrough
CT: control target
= control target key end

     0   :  { %s1396_s0 = inlined_call_operand.vmem [shape: f32[2,384], index: 0, kind: input, shape index: {}]   ;;  %s1397_s1 = inlined_call_operand.vmem [shape: f32[64,1], index: 1, kind: input, shape index: {}]   ;;  %s1398_s2 = inlined_call_operand.vmem [shape: f32[64,1], index: 2, kind: input, shape index: {}]   ;;  %s1399_s3 = inlined_call_operand.vmem [shape: f32[64,64], index: 3, kind: input, shape index: {}]   ;;  %s1400_s4 = inlined_call_operand.vmem [shape: f32[64,1], index: 4, kind: input, shape index: {}]   ;;  %s1401_s5 = inlined_call_operand.vmem [shape: f32[64,1], index: 5, kind: input, shape index: {}]   ;;  %s1402_s6 = inlined_call_operand.<no memory space> [shape: f32[1,1], index: 6, kind: input, shape index: {}]   ;;  %s1403_s7 = inlined_call_operand.hbm [shape: f32[1,384], index: 7, kind: output, shape index: {0}]   ;;  %s1404_s8 = inlined_call_operand.hbm [shape: f32[1,384], index: 8, kind: output, shape index: {1}]  }
   0x1   :  { %v14_v0 = vstv %s1402_s6 }
   0x2   :  { %15 = vst [vmem:[#allocation2] sm:$0x1] %v14_v0 }
   0x3   :  { %16 = vsyncpa [#allocation4], 0 }
   0x4   :  { %18 = vsyncpa [#allocation4 + $0x1], 0 }
   0x5   :  { %19 = vsyncpa [#allocation6], 0 }
   0x6   :  { %21 = vsyncpa [#allocation6 + $0x1], 0  ;;  %s1131_s29 = smov 0   ;;  %s1133_s30 = smov 0  }
   0x7   :  { %s1135_s9 = smov 0   ;;  %s1137_s10 = smov 0  }
   0x8 LB: > { %s1152_s6 = sadd.s32 4294967295, %s1078_s10   ;;  %s848_s11 = sadd.s32 4294967294, %s1078_s10   ;;  %s1078_s10 = sphi %s1137_s10, %s1410_s10   ;;  %s1074_s9 = sphi %s1135_s9, %s1409_s9   ;;  %s1070_s30 = sphi %s1133_s30, %s1408_s30   ;;  %s1066_s29 = sphi %s1131_s29, %s1407_s29  }
   0x9   : > { %s1156_s12 = sadd.s32 1, %s1078_s10   ;;  %s186_s13 = sadd.s32 1, %s1074_s9 }
   0xa   : > { %s183_s14 = ssub.s32 %s1078_s10, %s1156_s12  ;;  %p196_p0 = scmp.ne.s32.totalorder %s1074_s9, %s1070_s30 }
   0xb   : > { %p184_p1 = scmp.eq.s32.totalorder %s183_s14, 0  ;;  %p197_p2 = scmp.eq.s32.totalorder %s1152_s6, 2 }
   0xc   : > { %p202_p3 = scmp.ne.s32.totalorder %s1070_s30, %s1066_s29  ;;  %p203_p4 = scmp.eq.s32.totalorder %s848_s11, 2 }
   0xd   : > { %s1167_s15 = scalar_select %p184_p1, %s1074_s9, %s186_s13  }
   0xe   : > { %p1169_p5 = por %p197_p2, %p196_p0  ;;  %p1173_p6 = por %p203_p4, %p202_p3 }
   0xf   : > { %p851_p7 = scmp.ge.s32.totalorder %s1078_s10, 1  ;;  %p272_p8 = scmp.lt.s32.totalorder %s1078_s10, 4 }
  0x11   : > { %p273_p9 = pnand %p851_p7, %p272_p8 }
  0x12   : > { %v374_v1 = vld [vmem:[%s1398_s2] sm:$0xff] (!%p273_p9)  ;;  %v1080_v3 = vmov (!%p273_p9), 0   ;;  %v375_v4 = vld [vmem:[%s1398_s2 + $0x8] sm:$0xff] (!%p273_p9)  ;;  %v317_v6 = vld [vmem:[%s1397_s1 + $0x18] sm:$0xff] (!%p273_p9)  ;;  %vm494_vm0 = vcmask (!%p273_p9), 523264   ;;  %p308_p10 = scmp.lt.s32.totalorder (!%p273_p9), %s1152_s6, 2 }
  0x13   : > { %276 = sbr.rel (%p273_p9) target bundleno = 660 (0x294), region = 48  ;;  %v314_v2 = vld [vmem:[%s1397_s1] sm:$0xff] (!%p273_p9)  ;;  %983 = vset.pattern.permute.xlu1 (!%p273_p9), %v1080_v3  ;;  %982 = vset.pattern.permute.xlu0 (!%p273_p9), %v1080_v3  ;;  %v315_v5 = vld [vmem:[%s1397_s1 + $0x8] sm:$0xff] (!%p273_p9)  ;;  %v316_v7 = vld [vmem:[%s1397_s1 + $0x10] sm:$0xff] (!%p273_p9)  ;;  %s862_s19 = sshll.u32 (!%p273_p9), %s1152_s6, 7  ;;  %vm722_vm2 = vcmask (!%p273_p9), 1040384  }
  0x14   : > { %384 = vperm.xlu1 (!%p273_p9), %983, %v374_v1   ;;  %324 = vperm.xlu0 (!%p273_p9), %982, %v314_v2   ;;  %v377_v8 = vld [vmem:[%s1398_s2 + $0x18] sm:$0xff] (!%p273_p9)  ;;  %v376_v9 = vld [vmem:[%s1398_s2 + $0x10] sm:$0xff] (!%p273_p9)  ;;  %v319_v10 = vld [vmem:[%s1397_s1 + $0x28] sm:$0xff] (!%p273_p9)  ;;  %s1317_s21 = sand.u32 (!%p273_p9), 1, %s1070_s30   ;;  %s863_s23 = sshll.u32 (!%p273_p9), %s1152_s6, 4 }
  0x15   : > { %v318_v11 = vld [vmem:[%s1397_s1 + $0x20] sm:$0xff] (!%p273_p9)  ;;  %v379_v12 = vld [vmem:[%s1398_s2 + $0x28] sm:$0xff] (!%p273_p9)  ;;  %v321_v14 = vld [vmem:[%s1397_s1 + $0x38] sm:$0xff] (!%p273_p9)  ;;  %s301_s22 = scalar_lea.vmem (!%p273_p9), [#allocation3], %s1317_s21  ;;  %s1327_s26 = scalar_lea.hbm (!%p273_p9), %s1403_s7, %s863_s23 }
  0x16   : > { %v378_v13 = vld [vmem:[%s1398_s2 + $0x20] sm:$0xff] (!%p273_p9)  ;;  %v320_v15 = vld [vmem:[%s1397_s1 + $0x30] sm:$0xff] (!%p273_p9)  ;;  %v381_v16 = vld [vmem:[%s1398_s2 + $0x38] sm:$0xff] (!%p273_p9)  ;;  %s752_s27 = sshll.u32 (!%p273_p9), %s301_s22, 4  ;;  %s1081_s11 = smov (!%p273_p9), [#allocation3]   ;;  %s753_s27 = int_to_ptr.vmem [resolvable:$true] %s752_s27 }
  0x17   : > { %v380_v17 = vld [vmem:[%s1398_s2 + $0x30] sm:$0xff] (!%p273_p9)  ;;  %v447_v18 = vld [vmem:[%s1400_s4 + $0x8] sm:$0xff] (!%p273_p9)  ;;  %v446_v19 = vld [vmem:[%s1400_s4] sm:$0xff] (!%p273_p9)  ;;  %s984_s28 = scalar_lea.vmem (!%p273_p9), %s753_s27, 16 }
  0x18   : > { %389 = vperm.xlu1 (!%p273_p9), %983, %v375_v4   ;;  %329 = vperm.xlu0 (!%p273_p9), %982, %v315_v5   ;;  %v449_v20 = vld [vmem:[%s1400_s4 + $0x18] sm:$0xff] (!%p273_p9)  ;;  %v448_v21 = vld [vmem:[%s1400_s4 + $0x10] sm:$0xff] (!%p273_p9)  ;;  %v438_v22 = vld [vmem:[%s1399_s3] sm:$0xff] (!%p273_p9)  ;;  %p985_p11 = scmp.ne.s32.totalorder (!%p273_p9), %s753_s27, %s984_s28 }
  0x19   : > { %v442_v23 = vld [vmem:[%s1399_s3 + $0x20] sm:$0xff] (!%p273_p9)  ;;  %v633_v24 = vld [vmem:[%s1401_s5 + $0x8] sm:$0xff] (!%p273_p9)  ;;  %899 = vmatprep.mubr.msk.f32.mxu0 (!%p273_p9), %vm494_vm0, %v438_v22  ;;  %v634_v26 = vld [vmem:[%s1401_s5 + $0x10] sm:$0xff] (!%p273_p9) }
  0x1a   : > { %v632_v25 = vld [vmem:[%s1401_s5] sm:$0xff]  ;;  %905 = vmatprep.mubr.msk.f32.mxu1 %vm494_vm0, %v442_v23  ;;  %v635_v28 = vld [vmem:[%s1401_s5 + $0x18] sm:$0xff]  ;;  %v451_v29 = vld [vmem:[%s1400_s4 + $0x28] sm:$0xff]  ;;  %s309_s13 = scalar_select %p308_p10, %s1152_s6, 2 }
  0x1b   : > { %v450_v27 = vld [vmem:[%s1400_s4 + $0x20] sm:$0xff]  ;;  %v452_v31 = vld [vmem:[%s1400_s4 + $0x30] sm:$0xff]  ;;  %v637_v32 = vld [vmem:[%s1401_s5 + $0x28] sm:$0xff]  ;;  %p986_p12 = pnand %p985_p11, %p1169_p5 }
  0x1c   : > { %339 = vperm.xlu1 %983, %v317_v6   ;;  %334 = vperm.xlu0 %982, %v316_v7   ;;  %v636_v30 = vld [vmem:[%s1401_s5 + $0x20] sm:$0xff]  ;;  %v453_v33 = vld [vmem:[%s1400_s4 + $0x38] sm:$0xff]  ;;  %v638_v35 = vld [vmem:[%s1401_s5 + $0x30] sm:$0xff]  ;;  %s852_s14 = sshll.u32 %s309_s13, 1  ;;  %s988_s13 = sshll.u32 %s1081_s11, 4  ;;  %s989_s13 = int_to_ptr.vmem [resolvable:$false] %s988_s13 }
  0x1d   : > { %v639_v34 = vld [vmem:[%s1401_s5 + $0x38] sm:$0xff]  ;;  %v701_v36 = vld [vmem:[#allocation2] sm:$0x1]  ;;  %s1288_s20 = scalar_lea.vmem %s1396_s0, %s852_s14  ;;  %p987_p13 = pneg %p986_p12 }
  0x1e   : > { %v853_v37 = vld [vmem:[%s1288_s20] ss:$0 sm:$0xff]  ;;  %v441_v22 = vld [vmem:[%s1399_s3 + $0x18] sm:$0xff]  ;;  %s990_s14 = scalar_lea.vmem %s989_s13, 32  ;;  %p991_p0 = scmp.lt.s32.totalorder %s753_s27, %s989_s13 }
  0x1f   : > { %v445_v23 = vld [vmem:[%s1399_s3 + $0x38] sm:$0xff]  ;;  %p992_p1 = scmp.lt.s32.totalorder %s990_s14, %s984_s28 }
  0x20   : > { %399 = vperm.xlu1 %983, %v377_v8   ;;  %394 = vperm.xlu0 %982, %v376_v9  }
  0x21   : > { %p993_p2 = por %p992_p1, %p991_p0 }
  0x23   : > { %p994_p3 = pnand %p993_p2, %p987_p13 }
  0x24   : > { %349 = vperm.xlu1 %983, %v319_v10   ;;  %344 = vperm.xlu0 %982, %v318_v11  }
  0x28   : > { %409 = vperm.xlu1 %983, %v379_v12   ;;  %404 = vperm.xlu0 %982, %v378_v13  }
  0x2c   : > { %359 = vperm.xlu1 %983, %v321_v14   ;;  %354 = vperm.xlu0 %982, %v320_v15  }
  0x30   : > { %419 = vperm.xlu1 %983, %v381_v16   ;;  %414 = vperm.xlu0 %982, %v380_v17  }
  0x34   : > { %461 = vperm.xlu1 %983, %v447_v18   ;;  %456 = vperm.xlu0 %982, %v446_v19   ;;  %v439_v18 = vld [vmem:[%s1399_s3 + $0x8] sm:$0xff] }
  0x35   : > { %v443_v19 = vld [vmem:[%s1399_s3 + $0x28] sm:$0xff] }
  0x38   : > { %471 = vperm.xlu1 %983, %v449_v20   ;;  %466 = vperm.xlu0 %982, %v448_v21   ;;  %v440_v20 = vld [vmem:[%s1399_s3 + $0x10] sm:$0xff] }
  0x39   : > { %v444_v21 = vld [vmem:[%s1399_s3 + $0x30] sm:$0xff] }
  0x3c   : > { %647 = vperm.xlu1 %983, %v633_v24   ;;  %642 = vperm.xlu0 %982, %v632_v25  }
  0x40   : > { %652 = vperm.xlu1 %983, %v634_v26   ;;  %476 = vperm.xlu0 %982, %v450_v27  }
  0x44   : > { %657 = vperm.xlu1 %983, %v635_v28   ;;  %481 = vperm.xlu0 %982, %v451_v29  }
  0x48   : > { %662 = vperm.xlu1 %983, %v636_v30   ;;  %486 = vperm.xlu0 %982, %v452_v31  }
  0x4c   : > { %667 = vperm.xlu1 %983, %v637_v32   ;;  %491 = vperm.xlu0 %982, %v453_v33  }
  0x50   : > { %677 = vperm.xlu1 %983, %v639_v34   ;;  %672 = vperm.xlu0 %982, %v638_v35  }
  0x54   : > { %704 = vperm.xlu0 %982, %v701_v36  }
  0x93   : > { %v385_v38 = vpop.permute.xlu1 %384  ;;  %v325_v39 = vpop.permute.xlu0 %324 }
  0x94   : > { %v366_v40 = vmul.f32 %v853_v37, %v325_v39 }
  0x96   : > { %v422_v43 = vadd.f32 %v385_v38, %v366_v40 }
  0x97   : > { %v390_v41 = vpop.permute.xlu1 %389  ;;  %v330_v42 = vpop.permute.xlu0 %329 }
  0x98   : > { %v367_v44 = vmul.f32 %v853_v37, %v330_v42  ;;  %v430_v48 = vmax.f32 %v422_v43, 0.0 }
  0x9a   : > { %v423_v45 = vadd.f32 %v390_v41, %v367_v44 }
  0x9b   : > { %v340_v46 = vpop.permute.xlu1 %339  ;;  %v335_v47 = vpop.permute.xlu0 %334 }
  0x9c   : > { %v431_v49 = vmax.f32 %v423_v45, 0.0  ;;  %v369_v51 = vmul.f32 %v853_v37, %v340_v46  ;;  %v368_v52 = vmul.f32 %v853_v37, %v335_v47 }
  0x9e   : > { %v911_v50 = vpack.c.bf16 %v431_v49, %v430_v48 }
  0x9f   : > { %v400_v53 = vpop.permute.xlu1 %399  ;;  %v395_v54 = vpop.permute.xlu0 %394 }
  0xa0   : > { %v425_v55 = vadd.f32 %v400_v53, %v369_v51  ;;  %v424_v56 = vadd.f32 %v395_v54, %v368_v52  ;;  %912 = vmatprep.subr.bf16.mxu0 %v911_v50  ;;  %927 = vmatprep.subr.bf16.mxu1 %v911_v50 }
  0xa1   : > { %914 = vmatpush3.bf16.msra.mxu0 %v911_v50  ;;  %931 = vmatpush3.bf16.msra.mxu1 %v911_v50 }
  0xa2   : > { %v433_v57 = vmax.f32 %v425_v55, 0.0  ;;  %v432_v58 = vmax.f32 %v424_v56, 0.0 }
  0xa3   : > { %v350_v59 = vpop.permute.xlu1 %349  ;;  %v345_v60 = vpop.permute.xlu0 %344 }
  0xa4   : > { %v915_v61 = vpack.c.bf16 %v433_v57, %v432_v58  ;;  %v371_v62 = vmul.f32 %v853_v37, %v350_v59  ;;  %v370_v63 = vmul.f32 %v853_v37, %v345_v60 }
  0xa6   : > { %916 = vmatprep.subr.bf16.mxu0 %v915_v61  ;;  %928 = vmatprep.subr.bf16.mxu1 %v915_v61 }
  0xa7   : > { %v410_v0 = vpop.permute.xlu1 %409  ;;  %v405_v1 = vpop.permute.xlu0 %404  ;;  %918 = vmatpush3.bf16.msra.mxu0 %v915_v61  ;;  %932 = vmatpush3.bf16.msra.mxu1 %v915_v61 }
  0xa8   : > { %v427_v2 = vadd.f32 %v410_v0, %v371_v62  ;;  %v426_v3 = vadd.f32 %v405_v1, %v370_v63 }
  0xaa   : > { %v435_v4 = vmax.f32 %v427_v2, 0.0  ;;  %v434_v5 = vmax.f32 %v426_v3, 0.0 }
  0xab   : > { %v360_v6 = vpop.permute.xlu1 %359  ;;  %v355_v7 = vpop.permute.xlu0 %354 }
  0xac   : > { %v919_v8 = vpack.c.bf16 %v435_v4, %v434_v5  ;;  %v373_v9 = vmul.f32 %v853_v37, %v360_v6  ;;  %v372_v10 = vmul.f32 %v853_v37, %v355_v7 }
  0xae   : > { %920 = vmatprep.subr.bf16.mxu0 %v919_v8  ;;  %929 = vmatprep.subr.bf16.mxu1 %v919_v8 }
  0xaf   : > { %v420_v11 = vpop.permute.xlu1 %419  ;;  %v415_v12 = vpop.permute.xlu0 %414  ;;  %922 = vmatpush3.bf16.msra.mxu0 %v919_v8  ;;  %933 = vmatpush3.bf16.msra.mxu1 %v919_v8 }
  0xb0   : > { %v429_v13 = vadd.f32 %v420_v11, %v373_v9  ;;  %v428_v14 = vadd.f32 %v415_v12, %v372_v10 }
  0xb2   : > { %v437_v15 = vmax.f32 %v429_v13, 0.0  ;;  %v436_v16 = vmax.f32 %v428_v14, 0.0  ;;  %v707_v14 = vlaneseq }
  0xb3   : > { %v457_v24 = vpop.permute.xlu0 %456  ;;  %v462_v25 = vpop.permute.xlu1 %461 }
  0xb4   : > { %v923_v17 = vpack.c.bf16 %v437_v15, %v436_v16 }
  0xb6   : > { %924 = vmatprep.subr.bf16.mxu0 %v923_v17  ;;  %930 = vmatprep.subr.bf16.mxu1 %v923_v17 }
  0xb7   : > { %926 = vmatpush3.bf16.msra.mxu0 %v923_v17  ;;  %934 = vmatpush3.bf16.msra.mxu1 %v923_v17  ;;  %v467_v26 = vpop.permute.xlu0 %466  ;;  %v472_v27 = vpop.permute.xlu1 %471  ;;  %v708_v17 = vshrl.u32 %v707_v14, 7 }
  0xba   : > { %900 = vmatmul.mubr.msk.f32.vlgmr.msra.gmra.mrb[0].mxu0 %vm494_vm0, %v439_v18  ;;  %906 = vmatmul.mubr.msk.f32.vlgmr.msra.gmra.mrb[0].mxu1 %vm494_vm0, %v443_v19 }
  0xbb   : > { %902 = vmatprep.mubr.msk.f32.mxu0 %vm494_vm0, %v440_v20  ;;  %908 = vmatprep.mubr.msk.f32.mxu1 %vm494_vm0, %v444_v21  ;;  %v643_v28 = vpop.permute.xlu0 %642  ;;  %v648_v29 = vpop.permute.xlu1 %647  ;;  %v715_v20 = vand.u32 127, %v707_v14  ;;  %v709_v21 = vsub.s32 0, %v708_v17 }
  0xbe   : > { %903 = vmatmul.mubr.msk.f32.gmra.mrb[2].mxu0 %vm494_vm0, %v441_v22  ;;  %909 = vmatmul.mubr.msk.f32.gmra.mrb[2].mxu1 %vm494_vm0, %v445_v23  ;;  %v717_v23 = vstv %s862_s19 }
  0xbf   : > { %v477_v30 = vpop.permute.xlu0 %476  ;;  %v653_v31 = vpop.permute.xlu1 %652 }
  0xc3   : > { %v482_v32 = vpop.permute.xlu0 %481  ;;  %v658_v33 = vpop.permute.xlu1 %657 }
  0xc7   : > { %v487_v40 = vpop.permute.xlu0 %486  ;;  %v663_v52 = vpop.permute.xlu1 %662 }
  0xcb   : > { %v492_v60 = vpop.permute.xlu0 %491  ;;  %v668_v1 = vpop.permute.xlu1 %667 }
  0xcf   : > { %v673_v8 = vpop.permute.xlu0 %672  ;;  %v678_v11 = vpop.permute.xlu1 %677 }
 0x18d   : > { %v901_v34 = vpop.f32.mrb[0].mxu0  ;;  %v907_v35 = vpop.f32.mrb[0].mxu1 }
 0x18e   : > { %v591_v36 = vadd.f32 %v901_v34, %v462_v25  ;;  %v585_v37 = vpop.f32.mrb[1].mxu0  ;;  %v605_v38 = vpop.f32.mrb[1].mxu1  ;;  %v611_v53 = vadd.f32 %v907_v35, %v482_v32 }
 0x18f   : > { %v586_v39 = vadd.f32 %v585_v37, %v457_v24  ;;  %v606_v50 = vadd.f32 %v605_v38, %v477_v30  ;;  %v705_v24 = vpop.permute.xlu0 %704 }
 0x190   : > { %v625_v41 = vmax.f32 %v591_v36, 0.0  ;;  %v629_v61 = vmax.f32 %v611_v53, 0.0 }
 0x191   : > { %v624_v42 = vmax.f32 %v586_v39, 0.0  ;;  %v904_v43 = vpop.f32.mrb[2].mxu0  ;;  %v910_v44 = vpop.f32.mrb[2].mxu1  ;;  %v628_v57 = vmax.f32 %v606_v50, 0.0 }
 0x192   : > { %v681_v45 = vmul.f32 %v648_v29, %v625_v41  ;;  %v601_v46 = vadd.f32 %v904_v43, %v472_v27  ;;  %v595_v47 = vpop.f32.mrb[3].mxu0  ;;  %v615_v48 = vpop.f32.mrb[3].mxu1  ;;  %v621_v63 = vadd.f32 %v910_v44, %v492_v60  ;;  %v685_v5 = vmul.f32 %v668_v1, %v629_v61  ;;  %v313_v29 = vld [vmem:[%s1288_s20 + $0x1] sm:$0x1]  ;;  %s736_s20 = scalar_lea.sflag [#allocation4], %s1317_s21 }
 0x193   : > { %v680_v49 = vmul.f32 %v643_v28, %v624_v42  ;;  %v596_v51 = vadd.f32 %v595_v47, %v467_v26  ;;  %v616_v59 = vadd.f32 %v615_v48, %v487_v40  ;;  %v684_v2 = vmul.f32 %v663_v52, %v628_v57 }
 0x194   : > { %v627_v55 = vmax.f32 %v601_v46, 0.0  ;;  %v631_v6 = vmax.f32 %v621_v63, 0.0  ;;  %v718_v26 = vadd.s32 %v717_v23, %v715_v20  ;;  %v710_v27 = vrot.slane %v705_v24, %v709_v21 }
 0x195   : > { %v688_v54 = vadd.f32 %v681_v45, %v680_v49  ;;  %v626_v56 = vmax.f32 %v596_v51, 0.0  ;;  %v630_v4 = vmax.f32 %v616_v59, 0.0 }
 0x196   : > { %v683_v62 = vmul.f32 %v658_v33, %v627_v55  ;;  %v687_v12 = vmul.f32 %v678_v11, %v631_v6  ;;  %vm719_vm1 = vcmp.lt.s32.totalorder %v718_v26, 300 }
 0x197   : > { %v682_v58 = vmul.f32 %v653_v31, %v626_v56  ;;  %v686_v9 = vmul.f32 %v673_v8, %v630_v4 }
 0x199   : > { %v689_v0 = vadd.f32 %v688_v54, %v682_v58 }
 0x19b   : > { %v690_v3 = vadd.f32 %v689_v0, %v683_v62 }
 0x19d   : > { %v691_v7 = vadd.f32 %v690_v3, %v684_v2 }
 0x19f   : > { %v692_v10 = vadd.f32 %v691_v7, %v685_v5 }
 0x1a1   : > { %v693_v13 = vadd.f32 %v692_v10, %v686_v9 }
 0x1a3   : > { %v694_v15 = vadd.f32 %v693_v13, %v687_v12 }
 0x1a5   : > { %v695_v16 = vrot.slane %v694_v15, 4 }
 0x1a7   : > { %v696_v18 = vadd.f32 %v695_v16, %v694_v15 }
 0x1a9   : > { %v697_v19 = vrot.slane %v696_v18, 2 }
 0x1ab   : > { %v698_v22 = vadd.f32 %v697_v19, %v696_v18 }
 0x1ad   : > { %v699_v25 = vrot.slane %v698_v22, 1 }
 0x1af   : > { %v700_v28 = vadd.f32 %v699_v25, %v698_v22 }
 0x1b1   : > { %v711_v30 = vadd.f32 %v710_v27, %v700_v28 }
 0x1b3   : > { %v713_v31 = vsub.f32 %v711_v30, %v313_v29  ;;  %712 = vst [vmem:[%s301_s22] sm:$0x1] %v711_v30 }
 0x1b5   : > { %v720_v32 = vsel %vm719_vm1, %v713_v31, 0.0 }
 0x1b6   : > { %v721_v33 = vmul.f32 %v720_v32, %v720_v32 }
 0x1b8   : > { %v723_v34 = vsel %vm722_vm2, %v721_v33, 0.0 }
 0x1b9   : > { %724 = vadd.xlane.f32.xlu1 %v723_v34 }
 0x1ba   : > { %997 = shalt.err (!%p994_p3)
}
 0x1bb   : > { %s998_s18 = scalar_lea.hbm %s1327_s26, 16  ;;  %s1002_s24 = scalar_lea.hbm %s1403_s7, 48 }
 0x1bc   : > { %p999_p4 = scmp.ne.s32.totalorder %s1327_s26, %s998_s18  ;;  %p1003_p9 = scmp.lt.u32.totalorder %s1327_s26, %s1403_s7 }
 0x1bd   : > { %p1004_p10 = scmp.lt.u32.totalorder %s1002_s24, %s998_s18  ;;  %p1006_p12 = scmp.lt.u32.totalorder %s998_s18, %s1327_s26 }
 0x1be   : > { %p1000_p7 = pnand %p999_p4, %p1169_p5 }
 0x1bf   : > { %p1005_p11 = por %p1004_p10, %p1003_p9 }
 0x1c0   : > { %p1001_p8 = pneg %p1000_p7 }
 0x1c1   : > { %p1007_p13 = por %p1006_p12, %p1005_p11 }
 0x1c3   : > { %p1008_p0 = pnand %p1007_p13, %p1001_p8 }
 0x1c5   : > { %1011 = shalt.err (!%p1008_p0)
}
 0x1c6   : > { %937 = dma.vmem_to_hbm [thread:$0]  (%p1169_p5), %s753_s27, 16, %s1327_s26, %s736_s20  }
 0x1c7   : > { %s307_s28 = scalar_lea.vmem [#allocation5], %s1317_s21  ;;  %s1355_s20 = scalar_lea.hbm %s1404_s8, %s863_s23 }
 0x1c8   : > { %s765_s13 = sshll.u32 %s307_s28, 4  ;;  %s740_s18 = scalar_lea.sflag [#allocation6], %s1317_s21  ;;  %s1348_s13 = int_to_ptr.vmem [resolvable:$true] %s765_s13 }
 0x1c9   : > { %s1012_s19 = scalar_lea.vmem %s1348_s13, 16  ;;  %s1082_s22 = smov [#allocation5]  }
 0x1ca   : > { %p1013_p1 = scmp.ne.s32.totalorder %s1348_s13, %s1012_s19  ;;  %s1016_s24 = sshll.u32 %s1082_s22, 4  ;;  %s1017_s24 = int_to_ptr.vmem [resolvable:$false] %s1016_s24 }
 0x1cb   : > { %s1018_s25 = scalar_lea.vmem %s1017_s24, 32  ;;  %p1019_p4 = scmp.lt.s32.totalorder %s1348_s13, %s1017_s24 }
 0x1cc   : > { %p1014_p2 = pnand %p1013_p1, %p1169_p5  ;;  %p1020_p7 = scmp.lt.s32.totalorder %s1018_s25, %s1012_s19 }
 0x1ce   : > { %p1015_p3 = pneg %p1014_p2  ;;  %p1021_p8 = por %p1020_p7, %p1019_p4 }
 0x1d0   : > { %p1022_p9 = pnand %p1021_p8, %p1015_p3 }
 0x246   : > { %v725_v35 = vpop.xlane.xlu1 %724 }
 0x247   : > { %v726_v36 = vrot.slane %v725_v35, 4 }
 0x249   : > { %v727_v37 = vadd.f32 %v726_v36, %v725_v35 }
 0x24b   : > { %v728_v38 = vrot.slane %v727_v37, 2 }
 0x24d   : > { %v729_v39 = vadd.f32 %v728_v38, %v727_v37 }
 0x24f   : > { %v730_v40 = vrot.slane %v729_v39, 1 }
 0x251   : > { %v731_v41 = vadd.f32 %v730_v40, %v729_v39 }
 0x253   : > { %935 = vpush %v731_v41 }
 0x284   : > { %s936_s14 = spop %935 }
 0x285   : > { %v733_v42 = vstv %s936_s14 }
 0x286   : > { %734 = vst [vmem:[%s307_s28] sm:$0x1] %v733_v42 }
 0x287   : > { %1025 = shalt.err (!%p1022_p9)
}
 0x288   : > { %s1026_s6 = scalar_lea.hbm %s1355_s20, 16  ;;  %s1030_s11 = scalar_lea.hbm %s1404_s8, 48 }
 0x289   : > { %p1027_p10 = scmp.ne.s32.totalorder %s1355_s20, %s1026_s6  ;;  %p1031_p13 = scmp.lt.u32.totalorder %s1355_s20, %s1404_s8 }
 0x28a   : > { %p1032_p0 = scmp.lt.u32.totalorder %s1030_s11, %s1026_s6  ;;  %p1034_p2 = scmp.lt.u32.totalorder %s1026_s6, %s1355_s20 }
 0x28b   : > { %p1028_p11 = pnand %p1027_p10, %p1169_p5 }
 0x28c   : > { %p1033_p1 = por %p1032_p0, %p1031_p13 }
 0x28d   : > { %p1029_p12 = pneg %p1028_p11 }
 0x28e   : > { %p1035_p3 = por %p1034_p2, %p1033_p1 }
 0x290   : > { %p1036_p4 = pnand %p1035_p3, %p1029_p12 }
 0x292   : > { %1039 = shalt.err (!%p1036_p4)
}
 0x293   : > { %938 = dma.vmem_to_hbm [thread:$0]  (%p1169_p5), %s1348_s13, 16, %s1355_s20, %s740_s18  }
 0x294 PF: > { %p948_p7 = scmp.ge.s32.totalorder %s1078_s10, 2  ;;  %s777_s26 = sand.u32 1, %s1066_s29  }
 0x295   : > { %s778_s27 = scalar_lea.sflag [#allocation4], %s777_s26 }
 0x296   : > { %p942_p8 = pnand %p948_p7, %p1173_p6 }
 0x298   : > { %1057 = dma.done.wait (!%p942_p8), %s778_s27, 16  }
 0x299   : > { %1059 = vsyncadd (!%p942_p8), %s778_s27, 4294967280  ;;  %s786_s19 = scalar_lea.sflag [#allocation6], %s777_s26 }
 0x29a   : > { %1061 = dma.done.wait (!%p942_p8), %s786_s19, 16  }
 0x29b   : > { %1063 = vsyncadd (!%p942_p8), %s786_s19, 4294967280  ;;  %p24_p5 = scmp.ge.s32.totalorder %s1156_s12, 5   ;;  %s1407_s29 = smov %s1070_s30 }
 0x29c   : > { %s1408_s30 = smov %s1074_s9  ;;  %s1409_s9 = smov %s1167_s15 }
 0x29d   : > { %s1410_s10 = smov %s1156_s12  ;;  %26 = sbr.rel (!%p24_p5) target bundleno = 8 (0x8), region = 100 }
 0x2a4   :  { %790 = vsyncpa [#allocation4], 1 }
 0x2a5   :  { %792 = vsyncpa [#allocation4 + $0x1], 1 }
 0x2a6   :  { %793 = vsyncpa [#allocation6], 1 }
 0x2a7   :  { %795 = vsyncpa [#allocation6 + $0x1], 1 }

</bundles_post_ra>
